<compile_context>
chip_gen: v6e
topology: v6e:2x2x1
jax: 0.10.0
libtpu: 0.0.40
codegen_flags: <defaults>
</compile_context>

<pallas_src>
import functools

import jax
import jax.numpy as jnp
from jax import lax
from jax.experimental import pallas as pl
from jax.experimental.pallas import tpu as pltpu


def _pairwise_kernel(s_ref, t_ref, out_ref, gs_ref, gt_ref, *, n_c, inv_m2):
    """One (batch, channel-chunk) grid step.

    s_ref / t_ref : (M, TC) pooled-feature blocks — M pooled positions on
                    sublanes, TC channels on lanes.
    out_ref       : (1, 1, 1) per-batch loss, written on the last C chunk.
    gs_ref/gt_ref : (M, M) fp32 gram accumulators, persist across C chunks.
    """
    c = pl.program_id(1)

    @pl.when(c == 0)
    def _init():
        gs_ref[...] = jnp.zeros_like(gs_ref)
        gt_ref[...] = jnp.zeros_like(gt_ref)

    # Reference calls feat.float() *after* the maxpool: cast the pooled rows.
    s = s_ref[...].astype(jnp.float32)          # (M, TC)
    t = t_ref[...].astype(jnp.float32)          # (M, TC)

    # Partial gram over this channel chunk: contract over the lane axis.
    dn = (((1,), (1,)), ((), ()))
    gs_ref[...] += lax.dot_general(s, s, dn, preferred_element_type=jnp.float32)
    gt_ref[...] += lax.dot_general(t, t, dn, preferred_element_type=jnp.float32)

    @pl.when(c == n_c - 1)
    def _finalize():
        gs = gs_ref[...]
        gt = gt_ref[...]
        m = gs.shape[0]
        row = lax.broadcasted_iota(jnp.int32, (m, m), 0)
        col = lax.broadcasted_iota(jnp.int32, (m, m), 1)
        diag_mask = row == col

        def _normalize(g):
            # diag(G)[i] = ||f_i||^2, so G / (||f_i||+eps)(||f_j||+eps) is
            # exactly the gram of the (||.||+eps)-normalized features, i.e.
            # the reference's L2() normalization applied before the einsum.
            d = jnp.where(diag_mask, g, 0.0)
            norm_row = jnp.sqrt(jnp.sum(d, axis=1, keepdims=True)) + 1e-8  # (M,1)
            norm_col = jnp.sqrt(jnp.sum(d, axis=0, keepdims=True)) + 1e-8  # (1,M)
            return g / (norm_row * norm_col)

        err = jnp.sum((_normalize(gt) - _normalize(gs)) ** 2) * inv_m2
        out_ref[...] = jnp.full(out_ref.shape, err, dtype=out_ref.dtype)


def _vmem_capacity_bytes():
    """Generation-aware VMEM capacity (v5e/v6e: 128 MiB, v7x: 64 MiB/TC)."""
    try:
        info = pltpu.get_tpu_info()
        cap = getattr(info, "vmem_capacity_bytes", None)
        if cap:
            return int(cap)
    except Exception:
        pass
    return 64 << 20   # conservative fallback (v7x per-TensorCore)


def _ceil_mode_maxpool_nchw(x, k2, k3, P2, P3):
    """MaxPool2d(kernel=stride=(k2,k3), padding=0, ceil_mode=True) on NCHW."""
    pad2 = P2 * k2 - x.shape[2]
    pad3 = P3 * k3 - x.shape[3]
    # -inf padding reproduces ceil_mode; with stride == kernel every window
    # contains at least one valid element, so no output is ever -inf.
    return lax.reduce_window(
        x,
        jnp.array(-jnp.inf, dtype=x.dtype),
        lax.max,
        window_dimensions=(1, 1, k2, k3),
        window_strides=(1, 1, k2, k3),
        padding=((0, 0), (0, 0), (0, pad2), (0, pad3)),
    )


def pairwise_loss(preds_S, preds_T, scale=0.5, downcast_to_bf16=False):
    """Pallas equivalent of CriterionPairWiseforWholeFeatAfterPool.forward."""
    assert preds_S.shape == preds_T.shape
    B, C, D2, D3 = preds_T.shape
    k2 = max(1, int(D2 * scale))
    k3 = max(1, int(D3 * scale))
    P2 = -(-D2 // k2)          # ceil_mode=True output size
    P3 = -(-D3 // k3)
    M = P2 * P3

    if downcast_to_bf16 and preds_T.dtype == jnp.float32:
        # Optional: halves HBM bytes of the memory-bound pooling pass at the
        # cost of bf16-rounding pooled values (reference pools in f32).
        preds_S = preds_S.astype(jnp.bfloat16)
        preds_T = preds_T.astype(jnp.bfloat16)

    def pool_to_rows(x):
        # Single pass over the raw NCHW tensor; everything downstream only
        # touches the K-times-smaller pooled features.
        p = _ceil_mode_maxpool_nchw(x, k2, k3, P2, P3)      # (B, C, P2, P3)
        p = p.reshape(B, C, M)
        return jnp.swapaxes(p, 1, 2)                        # (B, M, C), lane-dense C

    xs = pool_to_rows(preds_S)
    xt = pool_to_rows(preds_T)

    # --- Channel tiling / VMEM budgeting (generation-aware) ------------------
    itemsize = xs.dtype.itemsize
    vmem_cap_budget = int(0.75 * _vmem_capacity_bytes())     # headroom for Mosaic
    # 2 inputs x double-buffering = 4 live blocks; keep ~4 MiB extra slack.
    per_block_budget = min(16 << 20,
                           max(256 << 10, (vmem_cap_budget - (4 << 20)) // 4))

    if C <= 128 or M * C * itemsize <= per_block_budget:
        TC, Cp = C, C          # whole channel axis: one fully contiguous DMA per step
    else:
        TC = (per_block_budget // (M * itemsize)) // 128 * 128
        TC = int(max(128, min(TC, C)))
        Cp = -(-C // TC) * TC
    if Cp != C:
        # Zero channels contribute nothing to the gram or the norms (exact).
        xs = jnp.pad(xs, ((0, 0), (0, 0), (0, Cp - C)))
        xt = jnp.pad(xt, ((0, 0), (0, 0), (0, Cp - C)))
    n_c = Cp // TC

    block_bytes = M * TC * itemsize
    vmem_need = 4 * block_bytes + 2 * M * M * 4 + (2 << 20)
    vmem_limit = int(min(max(vmem_need, 32 << 20), vmem_cap_budget))

    kernel = functools.partial(_pairwise_kernel, n_c=n_c,
                               inv_m2=float(1.0 / (M * M)))

    # TODO(synk): for B == 1 on v7x the second TensorCore idles; splitting the
    # C reduction into parallel groups with per-group (M, M) partial grams
    # would engage it (second-order for typical batched training calls).
    out = pl.pallas_call(
        kernel,
        out_shape=jax.ShapeDtypeStruct((B, 1, 1), jnp.float32),
        grid_spec=pltpu.PrefetchScalarGridSpec(
            num_scalar_prefetch=0,
            grid=(B, n_c),
            in_specs=[
                pl.BlockSpec((None, M, TC), lambda b, c: (b, 0, c)),
                pl.BlockSpec((None, M, TC), lambda b, c: (b, 0, c)),
            ],
            out_specs=pl.BlockSpec((1, 1, 1), lambda b, c: (b, 0, 0)),
            scratch_shapes=[
                pltpu.VMEM((M, M), jnp.float32),   # student gram accumulator
                pltpu.VMEM((M, M), jnp.float32),   # teacher gram accumulator
            ],
        ),
        compiler_params=pltpu.CompilerParams(
            dimension_semantics=("parallel", "arbitrary"),
            vmem_limit_bytes=vmem_limit,
        ),
    )(xs, xt)
    return jnp.sum(out)


def reference_loss(preds_S, preds_T, scale=0.5):
    """Pure-JAX reference mirroring the PyTorch module exactly."""
    def pool(x, k2, k3):
        B, C, D2, D3 = x.shape
        P2 = -(-D2 // k2)
        P3 = -(-D3 // k3)
        x = jnp.pad(x, ((0, 0), (0, 0), (0, P2 * k2 - D2), (0, P3 * k3 - D3)),
                    constant_values=-jnp.inf)
        return x.reshape(B, C, P2, k2, P3, k3).max(axis=(3, 5))

    D2, D3 = preds_T.shape[2], preds_T.shape[3]
    k2, k3 = max(1, int(D2 * scale)), max(1, int(D3 * scale))
    fS = pool(preds_S, k2, k3).astype(jnp.float32)
    fT = pool(preds_T, k2, k3).astype(jnp.float32)

    def sim(f):
        l2 = jnp.sqrt((f ** 2).sum(axis=1, keepdims=True)) + 1e-8
        f = f / l2
        f = f.reshape(f.shape[0], f.shape[1], -1)
        return jnp.einsum('icm,icn->imn', f, f)

    M = fT.shape[-1] * fT.shape[-2]
    return jnp.sum((sim(fT) - sim(fS)) ** 2) / (M * M)


if __name__ == "__main__":
    key = jax.random.PRNGKey(0)
    ka, kb = jax.random.split(key)
    # Small shapes consistent with the module: B=2, C=4, H=W=16 (NCHW)
    preds_S = jax.random.normal(ka, (2, 4, 16, 16), dtype=jnp.float32)
    preds_T = jax.random.normal(kb, (2, 4, 16, 16), dtype=jnp.float32)

    loss = jax.block_until_ready(pairwise_loss(preds_S, preds_T))
    ref = jax.block_until_ready(reference_loss(preds_S, preds_T))

    assert jnp.allclose(loss, ref, rtol=1e-5, atol=1e-6), (loss, ref)
    print("KERNEL_OK")
</pallas_src>

<mosaic_0001>
module attributes {stable_mosaic.version = 11 : i64} {
  func.func @_pairwise_kernel(%arg0: i32, %arg1: i32, %arg2: memref<1x4x4xf32, #tpu.memory_space<vmem>>, %arg3: memref<1x4x4xf32, #tpu.memory_space<vmem>>, %arg4: memref<1x1x1xf32, #tpu.memory_space<vmem>>, %arg5: memref<4x4xf32, #tpu.memory_space<vmem>>, %arg6: memref<4x4xf32, #tpu.memory_space<vmem>>) attributes {dimension_semantics = [#tpu.dimension_semantics<parallel>, #tpu.dimension_semantics<arbitrary>], iteration_bounds = array<i64: 2, 1>, scalar_prefetch = 0 : i64, scratch_operands = 2 : i64, tpu.core_type = #tpu.core_type<tc>, window_params = [{transform_indices = @transform_0, window_bounds = array<i64: 1, 4, 4>}, {transform_indices = @transform_1, window_bounds = array<i64: 1, 4, 4>}, {transform_indices = @transform_2, window_bounds = array<i64: 1, 1, 1>}]} {
    %c0_i32 = arith.constant 0 : i32
    %0 = arith.cmpi eq, %arg1, %c0_i32 : i32
    %1 = arith.extui %0 : i1 to i32
    %c0_i32_0 = arith.constant 0 : i32
    %2 = arith.cmpi ne, %1, %c0_i32_0 : i32
    scf.if %2 {
      %cst_17 = arith.constant 0.000000e+00 : f32
      %18 = vector.broadcast %cst_17 : f32 to vector<4x4xf32>
      %c0_18 = arith.constant 0 : index
      %c0_19 = arith.constant 0 : index
      %19 = vector.load %arg5[%c0_18, %c0_19] : memref<4x4xf32, #tpu.memory_space<vmem>>, vector<4x4xf32>
      tpu.vector_store %arg5[%c0_18, %c0_19], %18 {strides = array<i32>} : memref<4x4xf32, #tpu.memory_space<vmem>>, vector<4x4xf32>,
      %cst_20 = arith.constant 0.000000e+00 : f32
      %20 = vector.broadcast %cst_20 : f32 to vector<4x4xf32>
      %c0_21 = arith.constant 0 : index
      %c0_22 = arith.constant 0 : index
      %21 = vector.load %arg6[%c0_21, %c0_22] : memref<4x4xf32, #tpu.memory_space<vmem>>, vector<4x4xf32>
      tpu.vector_store %arg6[%c0_21, %c0_22], %20 {strides = array<i32>} : memref<4x4xf32, #tpu.memory_space<vmem>>, vector<4x4xf32>,
    } else {
    }
    %c0 = arith.constant 0 : index
    %c0_1 = arith.constant 0 : index
    %c0_2 = arith.constant 0 : index
    %3 = vector.load %arg2[%c0, %c0_1, %c0_2] : memref<1x4x4xf32, #tpu.memory_space<vmem>>, vector<1x4x4xf32>
    %4 = vector.shape_cast %3 : vector<1x4x4xf32> to vector<4x4xf32>
    %c0_3 = arith.constant 0 : index
    %c0_4 = arith.constant 0 : index
    %c0_5 = arith.constant 0 : index
    %5 = vector.load %arg3[%c0_3, %c0_4, %c0_5] : memref<1x4x4xf32, #tpu.memory_space<vmem>>, vector<1x4x4xf32>
    %6 = vector.shape_cast %5 : vector<1x4x4xf32> to vector<4x4xf32>
    %c0_6 = arith.constant 0 : index
    %c0_7 = arith.constant 0 : index
    %7 = vector.load %arg5[%c0_6, %c0_7] : memref<4x4xf32, #tpu.memory_space<vmem>>, vector<4x4xf32>
    %cst = arith.constant dense<0.000000e+00> : vector<4x4xf32>
    %8 = tpu.matmul %4, %4, %cst {dimension_numbers = #tpu.dot_dimension_numbers<[1], [1], [0], [0], [0, 0, 1, 0], [], []>} : vector<4x4xf32>, vector<4x4xf32>, vector<4x4xf32> -> vector<4x4xf32>
    %9 = arith.addf %7, %8 : vector<4x4xf32>
    %c0_8 = arith.constant 0 : index
    %c0_9 = arith.constant 0 : index
    %10 = vector.load %arg5[%c0_8, %c0_9] : memref<4x4xf32, #tpu.memory_space<vmem>>, vector<4x4xf32>
    tpu.vector_store %arg5[%c0_8, %c0_9], %9 {strides = array<i32>} : memref<4x4xf32, #tpu.memory_space<vmem>>, vector<4x4xf32>,
    %c0_10 = arith.constant 0 : index
    %c0_11 = arith.constant 0 : index
    %11 = vector.load %arg6[%c0_10, %c0_11] : memref<4x4xf32, #tpu.memory_space<vmem>>, vector<4x4xf32>
    %cst_12 = arith.constant dense<0.000000e+00> : vector<4x4xf32>
    %12 = tpu.matmul %6, %6, %cst_12 {dimension_numbers = #tpu.dot_dimension_numbers<[1], [1], [0], [0], [0, 0, 1, 0], [], []>} : vector<4x4xf32>, vector<4x4xf32>, vector<4x4xf32> -> vector<4x4xf32>
    %13 = arith.addf %11, %12 : vector<4x4xf32>
    %c0_13 = arith.constant 0 : index
    %c0_14 = arith.constant 0 : index
    %14 = vector.load %arg6[%c0_13, %c0_14] : memref<4x4xf32, #tpu.memory_space<vmem>>, vector<4x4xf32>
    tpu.vector_store %arg6[%c0_13, %c0_14], %13 {strides = array<i32>} : memref<4x4xf32, #tpu.memory_space<vmem>>, vector<4x4xf32>,
    %c0_i32_15 = arith.constant 0 : i32
    %15 = arith.cmpi eq, %arg1, %c0_i32_15 : i32
    %16 = arith.extui %15 : i1 to i32
    %c0_i32_16 = arith.constant 0 : i32
    %17 = arith.cmpi ne, %16, %c0_i32_16 : i32
    scf.if %17 {
      %c0_17 = arith.constant 0 : index
      %c0_18 = arith.constant 0 : index
      %18 = vector.load %arg5[%c0_17, %c0_18] : memref<4x4xf32, #tpu.memory_space<vmem>>, vector<4x4xf32>
      %c0_19 = arith.constant 0 : index
      %c0_20 = arith.constant 0 : index
      %19 = vector.load %arg6[%c0_19, %c0_20] : memref<4x4xf32, #tpu.memory_space<vmem>>, vector<4x4xf32>
      %20 = tpu.iota {dimensions = array<i32: 0>} : vector<4x4xi32>
      %21 = tpu.iota {dimensions = array<i32: 1>} : vector<4x4xi32>
      %22 = arith.cmpi eq, %20, %21 : vector<4x4xi32>
      %cst_21 = arith.constant 0.000000e+00 : f32
      %23 = vector.broadcast %cst_21 : f32 to vector<4x4xf32>
      %24 = arith.select %22, %19, %23 : vector<4x4xi1>, vector<4x4xf32>
      %cst_22 = arith.constant dense<0.000000e+00> : vector<4xf32>
      %25 = vector.multi_reduction <add>, %24, %cst_22 [1] : vector<4x4xf32> to vector<4xf32>
      %26 = vector.shape_cast %25 : vector<4xf32> to vector<4x1xf32>
      %27 = math.sqrt %26 : vector<4x1xf32>
      %cst_23 = arith.constant 9.99999993E-9 : f32
      %28 = vector.broadcast %cst_23 : f32 to vector<4x1xf32>
      %29 = arith.addf %27, %28 : vector<4x1xf32>
      %cst_24 = arith.constant dense<0.000000e+00> : vector<4xf32>
      %30 = vector.multi_reduction <add>, %24, %cst_24 [0] : vector<4x4xf32> to vector<4xf32>
      %31 = vector.shape_cast %30 : vector<4xf32> to vector<1x4xf32>
      %32 = math.sqrt %31 : vector<1x4xf32>
      %cst_25 = arith.constant 9.99999993E-9 : f32
      %33 = vector.broadcast %cst_25 : f32 to vector<1x4xf32>
      %34 = arith.addf %32, %33 : vector<1x4xf32>
      %35 = vector.broadcast %29 : vector<4x1xf32> to vector<4x4xf32>
      %36 = vector.broadcast %34 : vector<1x4xf32> to vector<4x4xf32>
      %37 = arith.mulf %35, %36 : vector<4x4xf32>
      %38 = arith.divf %19, %37 : vector<4x4xf32>
      %cst_26 = arith.constant 0.000000e+00 : f32
      %39 = vector.broadcast %cst_26 : f32 to vector<4x4xf32>
      %40 = arith.select %22, %18, %39 : vector<4x4xi1>, vector<4x4xf32>
      %cst_27 = arith.constant dense<0.000000e+00> : vector<4xf32>
      %41 = vector.multi_reduction <add>, %40, %cst_27 [1] : vector<4x4xf32> to vector<4xf32>
      %42 = vector.shape_cast %41 : vector<4xf32> to vector<4x1xf32>
      %43 = math.sqrt %42 : vector<4x1xf32>
      %cst_28 = arith.constant 9.99999993E-9 : f32
      %44 = vector.broadcast %cst_28 : f32 to vector<4x1xf32>
      %45 = arith.addf %43, %44 : vector<4x1xf32>
      %cst_29 = arith.constant dense<0.000000e+00> : vector<4xf32>
      %46 = vector.multi_reduction <add>, %40, %cst_29 [0] : vector<4x4xf32> to vector<4xf32>
      %47 = vector.shape_cast %46 : vector<4xf32> to vector<1x4xf32>
      %48 = math.sqrt %47 : vector<1x4xf32>
      %cst_30 = arith.constant 9.99999993E-9 : f32
      %49 = vector.broadcast %cst_30 : f32 to vector<1x4xf32>
      %50 = arith.addf %48, %49 : vector<1x4xf32>
      %51 = vector.broadcast %45 : vector<4x1xf32> to vector<4x4xf32>
      %52 = vector.broadcast %50 : vector<1x4xf32> to vector<4x4xf32>
      %53 = arith.mulf %51, %52 : vector<4x4xf32>
      %54 = arith.divf %18, %53 : vector<4x4xf32>
      %55 = arith.subf %38, %54 : vector<4x4xf32>
      %56 = arith.mulf %55, %55 : vector<4x4xf32>
      %57 = vector.shape_cast %56 : vector<4x4xf32> to vector<1x4x4xf32>
      %cst_31 = arith.constant dense<0.000000e+00> : vector<1xf32>
      %58 = vector.multi_reduction <add>, %57, %cst_31 [1, 2] : vector<1x4x4xf32> to vector<1xf32>
      %59 = vector.shape_cast %58 : vector<1xf32> to vector<1x1x1xf32>
      %60 = vector.extract %59[0, 0, 0] : f32 from vector<1x1x1xf32>
      %cst_32 = arith.constant 6.250000e-02 : f32
      %61 = arith.mulf %60, %cst_32 : f32
      %62 = vector.broadcast %61 : f32 to vector<1x1x1xf32>
      %c0_33 = arith.constant 0 : index
      %c0_34 = arith.constant 0 : index
      %c0_35 = arith.constant 0 : index
      %63 = vector.load %arg4[%c0_33, %c0_34, %c0_35] : memref<1x1x1xf32, #tpu.memory_space<vmem>>, vector<1x1x1xf32>
      tpu.vector_store %arg4[%c0_33, %c0_34, %c0_35], %62 {strides = array<i32>} : memref<1x1x1xf32, #tpu.memory_space<vmem>>, vector<1x1x1xf32>,
    } else {
    }
    return
  }
  func.func @transform_0(%arg0: i32, %arg1: i32) -> (i32, i32, i32) {
    %c0_i32 = arith.constant 0 : i32
    %c0_i32_0 = arith.constant 0 : i32
    return %arg0, %c0_i32, %arg1 : i32, i32, i32
  }
  func.func @transform_1(%arg0: i32, %arg1: i32) -> (i32, i32, i32) {
    %c0_i32 = arith.constant 0 : i32
    %c0_i32_0 = arith.constant 0 : i32
    return %arg0, %c0_i32, %arg1 : i32, i32, i32
  }
  func.func @transform_2(%arg0: i32, %arg1: i32) -> (i32, i32, i32) {
    %c0_i32 = arith.constant 0 : i32
    %c0_i32_0 = arith.constant 0 : i32
    %c0_i32_1 = arith.constant 0 : i32
    return %arg0, %c0_i32, %c0_i32_0 : i32, i32, i32
  }
}

</mosaic_0001>

<bundles_post_ra>
// kernel: tpu_custom_call.1
= control target key start
LH: loop header
LB: loop body
LE: loop exit
PB: predicated region body
PF: predicated region fallthrough
CT: control target
= control target key end

     0   :  { %7 = vsyncpa [#allocation5], 0  ;;  %s930_s0 = inlined_call_operand.hbm [shape: f32[2,4,4], index: 0, kind: input, shape index: {}]   ;;  %s931_s1 = inlined_call_operand.hbm [shape: f32[2,4,4], index: 1, kind: input, shape index: {}]   ;;  %s932_s2 = inlined_call_operand.vmem [shape: f32[2,1,1], index: 2, kind: output, shape index: {}]  }
   0x1   :  { %9 = vsyncpa [#allocation5 + $0x1], 0 }
   0x2   :  { %10 = vsyncpa [#allocation7], 0 }
   0x3   :  { %12 = vsyncpa [#allocation7 + $0x1], 0  ;;  %s789_s9 = smov 0   ;;  %s791_s10 = smov 0  }
   0x4   :  { %s793_s11 = smov 0   ;;  %s795_s12 = smov 0  }
   0x5   :  { %s797_s13 = smov 0   ;;  %s799_s14 = smov 0  }
   0x6 LB: > { %s551_s15 = sadd.s32 4294967295, %s768_s14   ;;  %s30_s16 = sadd.s32 1, %s764_s13  ;;  %s768_s14 = sphi %s799_s14, %s18_s14   ;;  %s764_s13 = sphi %s797_s13, %s941_s13   ;;  %s760_s12 = sphi %s795_s12, %s940_s12   ;;  %s756_s11 = sphi %s793_s11, %s939_s11   ;;  %s752_s10 = sphi %s791_s10, %s938_s10   ;;  %s748_s9 = sphi %s789_s9, %s937_s9  }
   0x7   : > { %p32_p0 = scmp.ge.s32.totalorder %s30_s16, 2  ;;  %s39_s17 = sadd.s32 1, %s756_s11 }
   0x8   : > { %p46_p1 = scmp.ne.s32.totalorder %s756_s11, %s752_s10  ;;  %p47_p2 = scmp.eq.s32.totalorder %s768_s14, 0 }
   0x9   : > { %s943_s16 = smov (%p32_p0, %s30_s16), 0  ;;  %p52_p4 = scmp.ne.s32.totalorder %s752_s10, %s748_s9 }
   0xa   : > { %p825_p3 = por %p47_p2, %p46_p1  ;;  %s34_s19 = ssub.s32 %s764_s13, %s943_s16 }
   0xb   : > { %p53_p5 = scmp.eq.s32.totalorder %s551_s15, 0  ;;  %p37_p6 = scmp.eq.s32.totalorder %s34_s19, 0 }
   0xc   : > { %p595_p8 = scmp.lt.s32.totalorder %s768_s14, 2  ;;  %s841_s22 = sand.u32 1, %s756_s11  }
   0xd   : > { %p832_p7 = por %p53_p5, %p52_p4  ;;  %s556_s23 = sshll.u32 %s764_s13, 6 }
   0xe   : > { %s838_s21 = scalar_select %p37_p6, %s756_s11, %s39_s17  }
   0xf   : > { %s555_s24 = sshll.u32 %s841_s22, 2  ;;  %s140_s27 = scalar_lea.hbm %s930_s0, %s556_s23 }
  0x10   : > { %s134_s28 = scalar_lea.vmem [#allocation4], %s555_s24  ;;  %p850_p9 = pnand %p595_p8, %p825_p3 }
  0x11   : > { %s142_s29 = sshll.u32 %s134_s28, 4  ;;  %p559_p10 = scmp.ge.s32.totalorder %s768_s14, 1  ;;  %s143_s29 = int_to_ptr.vmem [resolvable:$true] %s142_s29 }
  0x12   : > { %p166_p11 = scmp.lt.s32.totalorder %s768_s14, 3  ;;  %s131_s3 = scalar_lea.sflag [#allocation5], %s841_s22 }
  0x13   : > { %p660_p12 = pneg %p850_p9  ;;  %s671_s4 = scalar_lea.vmem %s143_s29, 64 }
  0x14   : > { %p672_p13 = scmp.ne.s32.totalorder %s143_s29, %s671_s4  ;;  %s770_s5 = smov [#allocation4]  }
  0x15   : > { %s676_s6 = sshll.u32 %s770_s5, 4  ;;  %s677_s6 = int_to_ptr.vmem [resolvable:$false] %s676_s6 }
  0x16   : > { %p674_p0 = pnand %p672_p13, %p660_p12  ;;  %s678_s7 = scalar_lea.vmem %s677_s6, 128 }
  0x17   : > { %p679_p2 = scmp.lt.s32.totalorder %s143_s29, %s677_s6  ;;  %p680_p3 = scmp.lt.s32.totalorder %s678_s7, %s671_s4 }
  0x18   : > { %p675_p1 = pneg %p674_p0 }
  0x19   : > { %p681_p4 = por %p680_p3, %p679_p2 }
  0x1b   : > { %p682_p5 = pnand %p681_p4, %p675_p1 }
  0x1d   : > { %685 = shalt.err (!%p682_p5)
}
  0x1e   : > { %591 = dma.hbm_to_vmem [thread:$0]  (!%p850_p9), %s140_s27, 64, %s143_s29, %s131_s3  }
  0x1f   : > { %p868_p6 = pnand %p559_p10, %p166_p11  ;;  %s159_s17 = scalar_lea.hbm %s931_s1, %s556_s23 }
  0x20   : > { %s153_s18 = scalar_lea.vmem [#allocation6], %s555_s24  ;;  %s150_s25 = scalar_lea.sflag [#allocation7], %s841_s22 }
  0x21   : > { %s161_s19 = sshll.u32 %s153_s18, 4  ;;  %s771_s27 = smov [#allocation6]   ;;  %s162_s19 = int_to_ptr.vmem [resolvable:$true] %s161_s19 }
  0x22   : > { %s699_s26 = scalar_lea.vmem %s162_s19, 64  ;;  %s704_s28 = sshll.u32 %s771_s27, 4  ;;  %s705_s28 = int_to_ptr.vmem [resolvable:$false] %s704_s28 }
  0x23   : > { %p700_p8 = scmp.ne.s32.totalorder %s162_s19, %s699_s26  ;;  %s706_s29 = scalar_lea.vmem %s705_s28, 128 }
  0x24   : > { %p707_p10 = scmp.lt.s32.totalorder %s162_s19, %s705_s28  ;;  %p708_p11 = scmp.lt.s32.totalorder %s706_s29, %s699_s26 }
  0x25   : > { %p702_p13 = pnand %p700_p8, %p660_p12 }
  0x26   : > { %p709_p1 = por %p708_p11, %p707_p10 }
  0x27   : > { %p703_p0 = pneg %p702_p13 }
  0x29   : > { %p710_p2 = pnand %p709_p1, %p703_p0 }
  0x2b   : > { %713 = shalt.err (!%p710_p2)
}
  0x2c   : > { %594 = dma.hbm_to_vmem [thread:$0]  (!%p850_p9), %s159_s17, 64, %s162_s19, %s150_s25  }
  0x2d   : > { %170 = sbr.rel (%p868_p6) target bundleno = 653 (0x28d), region = 28  ;;  %s172_s22 = sand.u32 (!%p868_p6), 1, %s752_s10  }
  0x2e   : > { %s560_s23 = sshll.u32 (!%p868_p6), %s172_s22, 2  ;;  %s173_s24 = scalar_lea.sflag (!%p868_p6), [#allocation5], %s172_s22 }
  0x2f   : > { %s176_s3 = scalar_lea.vmem (!%p868_p6), [#allocation4], %s560_s23 }
  0x32   : > { %739 = dma.done.wait (%p832_p7), %s173_s24, 64  }
  0x33   : > { %741 = vsyncadd (%p832_p7), %s173_s24, 4294967232  ;;  %s182_s4 = scalar_lea.sflag [#allocation7], %s172_s22  ;;  %s185_s5 = scalar_lea.vmem [#allocation6], %s560_s23 }
  0x34   : > { %743 = dma.done.wait (%p832_p7), %s182_s4, 64  }
  0x35   : > { %745 = vsyncadd (%p832_p7), %s182_s4, 4294967232  ;;  %vm216_vm0 = vcmask 27648   ;;  %v772_v0 = vmov 0.0   ;;  %vm773_vm1 = vmmov 0   ;;  %vm222_vm2 = vcmask 31744   ;;  %p209_p7 = scmp.lt.s32.totalorder %s760_s12, 1 }
  0x36   : > { %572 = vmatprep.subr.mxu0 %v772_v0  ;;  %577 = vmatprep.subr.mxu1 %v772_v0  ;;  %217 = vst.msk [vmem:[#allocation2] sm:$0xf] %vm216_vm0, %v772_v0  ;;  %218 = vst.msk [vmem:[#allocation3] sm:$0xf] %vm216_vm0, %v772_v0  ;;  %v219_v1 = vld [vmem:[%s176_s3] sm:$0xf]  ;;  %v380_v7 = vlaneseq }
  0x37   : > { %574 = vmatprep.mubr.msk.f32.mxu0 %vm773_vm1, %v772_v0  ;;  %579 = vmatprep.mubr.msk.f32.mxu1 %vm773_vm1, %v772_v0  ;;  %v220_v2 = vld [vmem:[%s185_s5] sm:$0xf]  ;;  %s945_s12 = smov (!%p209_p7, %s760_s12), 1  ;;  %vm457_vm12 = vcmask 0  }
  0x38   : > { %573 = vmatpush3.xpose.msk.msra.mxu0 %vm222_vm2, %v219_v1  ;;  %578 = vmatpush3.xpose.msk.msra.mxu1 %vm222_vm2, %v220_v2  ;;  %v381_v12 = vshrl.u32 %v380_v7, 7  ;;  %v383_v13 = vand.u32 127, %v380_v7  ;;  %s211_s7 = scalar_lea.vmem %s932_s2, %s945_s12 }
  0x3a   : > { %vm384_vm3 = vcmp.eq.s32.totalorder %v381_v12, %v383_v13 }
  0x3b   : > { %575 = vmatmul.mubr.msk.f32.vlgmr.msra.gmra.mxu0 %vm222_vm2, %v219_v1  ;;  %580 = vmatmul.mubr.msk.f32.vlgmr.msra.gmra.mxu1 %vm222_vm2, %v220_v2 }
  0x3d   : > { %v221_v3 = vld [vmem:[#allocation2] sm:$0xf]  ;;  %v299_v4 = vld [vmem:[#allocation3] sm:$0xf] }
  0xfb   : > { %v292_v5 = vpop.f32.mrf.mxu0  ;;  %v369_v6 = vpop.f32.mrf.mxu1 }
  0xfc   : > { %v296_v8 = vadd.f32 %v292_v5, %v221_v3  ;;  %v373_v9 = vadd.f32 %v369_v6, %v299_v4 }
  0xfd   : > { %v581_v10 = vpop.f32.mrf.mxu1  ;;  %v576_v11 = vpop.f32.mrf.mxu0 }
  0xfe   : > { %298 = vst.msk [vmem:[#allocation2] sm:$0xf] %vm216_vm0, %v296_v8  ;;  %374 = vst.msk [vmem:[#allocation3] sm:$0xf] %vm216_vm0, %v373_v9 }
 0x105   : > { %v896_v14 = vld [vmem:[#allocation3] sm:$0xf]  ;;  %v898_v15 = vld [vmem:[#allocation2] sm:$0xf] }
 0x106   : > { %v385_v16 = vsel %vm384_vm3, %v896_v14, 0.0  ;;  %v414_v18 = vsel %vm384_vm3, %v898_v15, 0.0 }
 0x107   : > { %v386_v17 = vsel %vm216_vm0, %v385_v16, 0.0  ;;  %v415_v19 = vsel %vm216_vm0, %v414_v18, 0.0 }
 0x108   : > { %387 = vadd.xlane.f32.xlu0 %v386_v17  ;;  %v397_v20 = vrot.slane %v386_v17, 4  ;;  %v426_v22 = vrot.slane %v415_v19, 4 }
 0x10a   : > { %v398_v21 = vadd.f32 %v397_v20, %v386_v17  ;;  %v427_v24 = vadd.f32 %v426_v22, %v415_v19 }
 0x10c   : > { %416 = vadd.xlane.f32.xlu0 %v415_v19  ;;  %v399_v23 = vrot.slane %v398_v21, 2  ;;  %v428_v26 = vrot.slane %v427_v24, 2 }
 0x10e   : > { %v400_v25 = vadd.f32 %v399_v23, %v398_v21  ;;  %v429_v28 = vadd.f32 %v428_v26, %v427_v24 }
 0x110   : > { %v401_v27 = vrot.slane %v400_v25, 1  ;;  %v430_v30 = vrot.slane %v429_v28, 1 }
 0x112   : > { %v402_v29 = vadd.f32 %v401_v27, %v400_v25  ;;  %v431_v31 = vadd.f32 %v430_v30, %v429_v28 }
 0x114   : > { %646 = vrsqrt.f32 %v402_v29  ;;  %vm405_vm4 = vcmp.eq.f32.partialorder %v402_v29, inf  ;;  %v408_v40 = vand.u32 2147483648, %v402_v29  ;;  %vm407_vm5 = vcmp.eq.f32.partialorder %v402_v29, 0.0 }
 0x115   : > { %648 = vrsqrt.f32 %v431_v31  ;;  %vm434_vm7 = vcmp.eq.f32.partialorder %v431_v31, inf  ;;  %v437_v48 = vand.u32 2147483648, %v431_v31  ;;  %vm436_vm9 = vcmp.eq.f32.partialorder %v431_v31, 0.0 }
 0x121   : > { %v647_v34 = vpop.eup %646 }
 0x122   : > { %v404_v35 = vmul.f32 %v647_v34, %v402_v29  ;;  %v649_v36 = vpop.eup %648 }
 0x123   : > { %v433_v38 = vmul.f32 %v649_v36, %v431_v31 }
 0x124   : > { %v406_v37 = vsel %vm405_vm4, %v402_v29, %v404_v35 }
 0x125   : > { %v409_v43 = vsel %vm407_vm5, %v408_v40, %v406_v37  ;;  %v435_v45 = vsel %vm434_vm7, %v431_v31, %v433_v38 }
 0x126   : > { %v410_v50 = vadd.f32 1e-08, %v409_v43  ;;  %v438_v53 = vsel %vm436_vm9, %v437_v48, %v435_v45 }
 0x127   : > { %v439_v58 = vadd.f32 1e-08, %v438_v53 }
 0x191   : > { %v388_v32 = vpop.xlane.xlu0 %387 }
 0x192   : > { %650 = vrsqrt.f32 %v388_v32  ;;  %vm391_vm6 = vcmp.eq.f32.partialorder %v388_v32, inf  ;;  %v394_v42 = vand.u32 2147483648, %v388_v32  ;;  %vm393_vm8 = vcmp.eq.f32.partialorder %v388_v32, 0.0 }
 0x195   : > { %v417_v33 = vpop.xlane.xlu0 %416 }
 0x196   : > { %652 = vrsqrt.f32 %v417_v33  ;;  %vm420_vm10 = vcmp.eq.f32.partialorder %v417_v33, inf  ;;  %v423_v52 = vand.u32 2147483648, %v417_v33  ;;  %vm422_vm11 = vcmp.eq.f32.partialorder %v417_v33, 0.0 }
 0x19f   : > { %v651_v39 = vpop.eup %650 }
 0x1a0   : > { %v390_v41 = vmul.f32 %v651_v39, %v388_v32 }
 0x1a2   : > { %v392_v44 = vsel %vm391_vm6, %v388_v32, %v390_v41 }
 0x1a3   : > { %v653_v46 = vpop.eup %652  ;;  %v395_v47 = vsel %vm393_vm8, %v394_v42, %v392_v44 }
 0x1a4   : > { %v396_v49 = vadd.f32 1e-08, %v395_v47  ;;  %v419_v51 = vmul.f32 %v653_v46, %v417_v33 }
 0x1a6   : > { %v411_v54 = vmul.f32 %v410_v50, %v396_v49  ;;  %v421_v55 = vsel %vm420_vm10, %v417_v33, %v419_v51 }
 0x1a7   : > { %v424_v56 = vsel %vm422_vm11, %v423_v52, %v421_v55 }
 0x1a8   : > { %v425_v57 = vadd.f32 1e-08, %v424_v56  ;;  %654 = vrcp.f32 %v411_v54 }
 0x1aa   : > { %v440_v59 = vmul.f32 %v439_v58, %v425_v57 }
 0x1ac   : > { %656 = vrcp.f32 %v440_v59 }
 0x1b5   : > { %v655_v60 = vpop.eup %654 }
 0x1b6   : > { %v413_v62 = vmul.f32 %v655_v60, %v896_v14 }
 0x1b9   : > { %v657_v61 = vpop.eup %656 }
 0x1ba   : > { %v442_v63 = vmul.f32 %v657_v61, %v898_v15 }
 0x1bc   : > { %v443_v0 = vsub.f32 %v413_v62, %v442_v63 }
 0x1be   : > { %v444_v1 = vmul.f32 %v443_v0, %v443_v0 }
 0x1c0   : > { %v445_v2 = vsel %vm216_vm0, %v444_v1, 0.0 }
 0x1c1   : > { %446 = vadd.xlane.f32.xlu1 %v445_v2 }
 0x24a   : > { %v447_v3 = vpop.xlane.xlu1 %446 }
 0x24b   : > { %v448_v4 = vrot.slane %v447_v3, 4 }
 0x24d   : > { %v449_v5 = vadd.f32 %v448_v4, %v447_v3 }
 0x24f   : > { %v450_v6 = vrot.slane %v449_v5, 2 }
 0x251   : > { %v451_v7 = vadd.f32 %v450_v6, %v449_v5 }
 0x253   : > { %v452_v8 = vrot.slane %v451_v7, 1 }
 0x255   : > { %v453_v9 = vadd.f32 %v452_v8, %v451_v7 }
 0x257   : > { %582 = vpush %v453_v9 }
 0x288   : > { %s583_s20 = spop %582 }
 0x289   : > { %s455_s8 = smul.f32 0.0625, %s583_s20 }
 0x28b   : > { %v456_v10 = vstv %s455_s8 }
 0x28c   : > { %458 = vst.msk [vmem:[%s211_s7] sm:$0x1] %vm457_vm12, %v456_v10 }
 0x28d PF: > { %s18_s14 = sadd.s32 1, %s768_s14   ;;  %s937_s9 = smov %s752_s10 }
 0x28e   : > { %p15_p9 = scmp.ge.s32.totalorder %s18_s14, 4   ;;  %s938_s10 = smov %s756_s11 }
 0x28f   : > { %s939_s11 = smov %s838_s21  ;;  %s940_s12 = smov %s764_s13 }
 0x290   : > { %s941_s13 = smov %s943_s16  ;;  %17 = sbr.rel (!%p15_p9) target bundleno = 6 (0x6), region = 89 }
 0x295   :  { %476 = vsyncpa [#allocation5], 1 }
 0x296   :  { %478 = vsyncpa [#allocation5 + $0x1], 1 }
 0x297   :  { %479 = vsyncpa [#allocation7], 1 }
 0x298   :  { %481 = vsyncpa [#allocation7 + $0x1], 1 }

</bundles_post_ra>
